<compile_context>
chip_gen: v5e
topology: v5e:2x2
jax: 0.10.0
libtpu: 0.0.40
codegen_flags: <defaults>
</compile_context>

<pallas_src>
import functools

import jax
import jax.numpy as jnp
import numpy as np
from jax.experimental import pallas as pl
from jax.experimental.pallas import tpu as pltpu

_F32 = jnp.float32
_BF16 = jnp.bfloat16


def _reciprocal(x):
    # EUP reciprocal (separate issue slot); falls back to a divide.
    if hasattr(pl, "reciprocal"):
        return pl.reciprocal(x, approx=True)
    return 1.0 / x


def _elu_p1(u):
    # elu(u) + 1 (alpha = 1): the LinearAttention feature map.
    return jnp.where(u > 0, u + 1.0, jnp.exp(u))


# ----------------------------------------------------------------------------
# Phase 1: accumulate KV = k_phi^T v ([C, C]) and ksum ([1, C]) over L tiles.
# ----------------------------------------------------------------------------
def _kv_reduce_kernel(C, x_ref, wkv_ref, kv_ref, ks_ref):
    l = pl.program_id(1)

    @pl.when(l == 0)
    def _():
        kv_ref[...] = jnp.zeros_like(kv_ref)
        ks_ref[...] = jnp.zeros_like(ks_ref)

    x_bf = x_ref[0].astype(_BF16)                                    # [TL, C]
    # Fused k/v projection: one [TL, C] x [C, 2C] MXU matmul (f32 accumulate).
    kvp = jnp.dot(x_bf, wkv_ref[...], preferred_element_type=_F32)   # [TL, 2C]
    k_phi = _elu_p1(kvp[:, :C])                                      # f32
    v_bf = kvp[:, C:].astype(_BF16)

    # KV = k_phi^T @ v without materializing a transpose: contract dim 0 of
    # both bf16 operands, f32 accumulation on the MXU.
    kv_ref[0] += jax.lax.dot_general(
        k_phi.astype(_BF16), v_bf,
        dimension_numbers=(((0,), (0,)), ((), ())),
        preferred_element_type=_F32)                                 # [C, C]
    ks_ref[0] += jnp.sum(k_phi, axis=0, keepdims=True)               # [1, C]


# ----------------------------------------------------------------------------
# Phase 2: per token-tile message / merge / LN / MLP / LN / residual.
# ----------------------------------------------------------------------------
def _token_kernel(x_ref, kv_ref, ks_ref, wq_ref, hm_ref, wm_ref,
                  g1_ref, b1_ref, w1x_ref, w1m_ref, w2_ref, g2_ref, b2_ref,
                  o_ref):
    eps_attn = 1e-6
    eps_ln = 1e-5

    x = x_ref[0]                                                     # [TL, C] f32
    x_bf = x.astype(_BF16)

    q_phi = _elu_p1(jnp.dot(x_bf, wq_ref[...], preferred_element_type=_F32))

    hm = hm_ref[...]                                                 # [C, C] 0/1 bf16
    kv_bf = kv_ref[0].astype(_BF16) * hm                             # head-masked KV
    ksum = ks_ref[0]                                                 # [1, C] f32

    # Per-head denominator, broadcast back to C lanes via the head mask.
    # TODO(synk): swap for an f32 VPU segment-sum to drop this matmul.
    den = jnp.dot((q_phi * ksum).astype(_BF16), hm, preferred_element_type=_F32)
    z = _reciprocal(den + eps_attn)

    # The reference's values/L and *L factors cancel exactly -> folded away.
    msg = jnp.dot(q_phi.astype(_BF16), kv_bf, preferred_element_type=_F32) * z

    # merge (no bias) + LayerNorm1 (f32)
    msg = jnp.dot(msg.astype(_BF16), wm_ref[...], preferred_element_type=_F32)
    mu1 = jnp.mean(msg, axis=-1, keepdims=True)
    var1 = jnp.mean(jnp.square(msg - mu1), axis=-1, keepdims=True)
    msg = (msg - mu1) * jax.lax.rsqrt(var1 + eps_ln) * g1_ref[0] + b1_ref[0]

    # mlp(cat([x, message])) without the concat: W1 pre-split into halves;
    # message cast to bf16 once and reused.
    msg_bf = msg.astype(_BF16)
    h1 = (jnp.dot(x_bf, w1x_ref[...], preferred_element_type=_F32)
          + jnp.dot(msg_bf, w1m_ref[...], preferred_element_type=_F32))
    h1 = jnp.maximum(h1, 0.0)
    m2 = jnp.dot(h1.astype(_BF16), w2_ref[...], preferred_element_type=_F32)

    # LayerNorm2 + residual (f32)
    mu2 = jnp.mean(m2, axis=-1, keepdims=True)
    var2 = jnp.mean(jnp.square(m2 - mu2), axis=-1, keepdims=True)
    m2 = (m2 - mu2) * jax.lax.rsqrt(var2 + eps_ln) * g2_ref[0] + b2_ref[0]

    o_ref[0] = x + m2


# ----------------------------------------------------------------------------
# pallas_call wrappers.
# ----------------------------------------------------------------------------
def _pick_l_tile(L, target=512):
    """Largest multiple of 8 that divides L and is <= target (else L)."""
    if L <= target:
        return L
    for cand in range(min(target, L) // 8 * 8, 0, -8):
        if L % cand == 0:
            return cand
    return L  # pathological L (no small divisor): fall back to one block


def _const_spec(shape):
    """BlockSpec for a grid-invariant operand (fetched once, single buffer)."""
    kwargs = {}
    if hasattr(pl, "Buffered"):
        kwargs["pipeline_mode"] = pl.Buffered(1)
    return pl.BlockSpec(shape, lambda n, l: (0,) * len(shape), **kwargs)


def _compiler_params(est_bytes, dim_sem):
    kwargs = {"dimension_semantics": dim_sem}
    # Raise the scoped-VMEM limit only when the rough estimate is likely above
    # the per-generation default (16 MiB v5e, 32 MiB v6e/v7x); never lower it
    # below 32 MiB and always keep headroom below physical capacity.
    if est_bytes > 12 * 1024 * 1024:
        cap = 64 * 1024 * 1024
        try:
            if jax.default_backend() == "tpu":
                cap = pltpu.get_tpu_info().vmem_capacity_bytes
        except Exception:
            pass
        limit = max(int(est_bytes * 1.5), 32 * 1024 * 1024)
        limit = min(limit, cap - 16 * 1024 * 1024)
        kwargs["vmem_limit_bytes"] = int(limit)
    return pltpu.CompilerParams(**kwargs)


def loftr_encoder_layer(x, kp, *, l_tile=512):
    """One LoFTREncoderLayer (linear self-attention) on token-major input.

    x: [N, L, C] float32.  Returns [N, L, C] float32.
    """
    N, L, C = x.shape
    TL = _pick_l_tile(L, l_tile)
    nLT = L // TL

    # ---- phase 1: KV / ksum reduction over token tiles ('arbitrary' axis) --
    wkv = kp["wkv"]
    est1 = (4 * TL * C * 4              # x in (double-buffered) + temps
            + 2 * TL * 2 * C * 4        # fused projection output + bf16 temps
            + C * 2 * C * 2             # wkv (single-buffered, bf16)
            + 4 * C * C * 4)            # kv / ksum accumulators
    kv, ksum = pl.pallas_call(
        functools.partial(_kv_reduce_kernel, C),
        grid=(N, nLT),
        in_specs=[pl.BlockSpec((1, TL, C), lambda n, l: (n, l, 0)),
                  _const_spec(wkv.shape)],
        out_specs=[pl.BlockSpec((1, C, C), lambda n, l: (n, 0, 0)),
                   pl.BlockSpec((1, 1, C), lambda n, l: (n, 0, 0))],
        out_shape=(jax.ShapeDtypeStruct((N, C, C), _F32),
                   jax.ShapeDtypeStruct((N, 1, C), _F32)),
        compiler_params=_compiler_params(est1, ("parallel", "arbitrary")),
    )(x, wkv)

    # ---- phase 2: per-tile message / MLP / LN / residual (fully parallel) --
    weight_order = ("wq", "head_mask", "wm", "ln1_g", "ln1_b",
                    "w1x", "w1m", "w2", "ln2_g", "ln2_b")
    weights = [kp[name] for name in weight_order]
    w_bytes = sum(int(np.prod(w.shape)) * w.dtype.itemsize for w in weights)
    est2 = (4 * TL * C * 4              # x in + out (double-buffered)
            + 10 * TL * C * 4           # f32/bf16 [TL, C] intermediates
            + TL * 2 * C * 4            # mlp hidden
            + 4 * C * C * 4             # kv + masked bf16 copy
            + 2 * w_bytes)
    in_specs = [pl.BlockSpec((1, TL, C), lambda n, l: (n, l, 0)),
                pl.BlockSpec((1, C, C), lambda n, l: (n, 0, 0)),
                pl.BlockSpec((1, 1, C), lambda n, l: (n, 0, 0))]
    in_specs += [_const_spec(w.shape) for w in weights]
    return pl.pallas_call(
        _token_kernel,
        grid=(N, nLT),
        in_specs=in_specs,
        out_specs=pl.BlockSpec((1, TL, C), lambda n, l: (n, l, 0)),
        out_shape=jax.ShapeDtypeStruct((N, L, C), _F32),
        compiler_params=_compiler_params(est2, ("parallel", "parallel")),
    )(x, kv, ksum, *weights)


# ----------------------------------------------------------------------------
# Parameter construction / preparation.
# ----------------------------------------------------------------------------
def make_params(key, d_model):
    """Master parameters, f32, [in, out] layout (nn.Linear weight is [out, in])."""
    ks = jax.random.split(key, 6)
    std = 0.02

    def lin(k, out_f, in_f):
        return (jax.random.normal(k, (out_f, in_f), _F32) * std).T

    return {
        "wq": lin(ks[0], d_model, d_model),
        "wk": lin(ks[1], d_model, d_model),
        "wv": lin(ks[2], d_model, d_model),
        "wm": lin(ks[3], d_model, d_model),
        "ln1_g": jnp.ones((1, d_model), _F32),
        "ln1_b": jnp.zeros((1, d_model), _F32),
        "mlp_w1": lin(ks[4], 2 * d_model, 2 * d_model),
        "mlp_w2": lin(ks[5], d_model, 2 * d_model),
        "ln2_g": jnp.ones((1, d_model), _F32),
        "ln2_b": jnp.zeros((1, d_model), _F32),
    }


def prepare_kernel_params(params, d_model, nhead):
    """bf16 MXU weights (fused k/v, split MLP W1), block-diag head mask, f32 LN."""
    C = d_model
    D = C // nhead
    ids = jnp.arange(C) // D
    head_mask = (ids[:, None] == ids[None, :]).astype(_BF16)         # [C, C]
    return {
        "wq": params["wq"].astype(_BF16),
        "wkv": jnp.concatenate([params["wk"], params["wv"]], axis=1).astype(_BF16),
        "head_mask": head_mask,
        "wm": params["wm"].astype(_BF16),
        "ln1_g": params["ln1_g"].astype(_F32),
        "ln1_b": params["ln1_b"].astype(_F32),
        "w1x": params["mlp_w1"][:C, :].astype(_BF16),
        "w1m": params["mlp_w1"][C:, :].astype(_BF16),
        "w2": params["mlp_w2"].astype(_BF16),
        "ln2_g": params["ln2_g"].astype(_F32),
        "ln2_b": params["ln2_b"].astype(_F32),
    }


# ----------------------------------------------------------------------------
# Full CascadeFeatureTransformer forward for the chosen config.
# ----------------------------------------------------------------------------
def cascade_feature_transformer_forward(feat0, feat1, idx_c01, idx_c10, params,
                                        *, nhead, layer_names):
    B, C, H0, W0 = feat0.shape
    _, _, H1, W1 = feat1.shape
    L0, L1 = H0 * W0, H1 * W1
    kp = prepare_kernel_params(params, C, nhead)

    # get_window_warp_idx: idx is [B, L, topk], so the stacked yx coords take
    # the "len != 3" branch -> idx_*_full is None and the warped coords would
    # only feed 'cross' layers (absent here); nothing needs computing.
    idx_c01_full = None
    idx_c10_full = None
    idx_c01_x2 = None
    idx_c10_x2 = None

    # NCHW -> token-major [B, L, C] once in the wrapper (single XLA transpose);
    # the kernels never transpose and all stores are lane-dense in C.
    f0 = feat0.reshape(B, C, L0).transpose(0, 2, 1)
    f1 = feat1.reshape(B, C, L1).transpose(0, 2, 1)

    for name in layer_names:
        if name == "self":  # self_attn_type == 'linear' -> LoFTREncoderLayer
            # Two independent pallas_calls (no HBM concat of feat0/feat1): the
            # re-DMA'd weights are far cheaper than round-tripping both feature
            # maps through HBM, and the phase-2 grid is fully 'parallel'.
            f0 = loftr_encoder_layer(f0, kp)
            f1 = loftr_encoder_layer(f1, kp)
        else:
            # TODO(synk): 'cross' needs CascadeQuadtreeBlock/CascadeQuadtreeAttention,
            # whose source was not provided; not implemented.
            raise NotImplementedError(name)

    idx_c01_full = idx_c01_x2 if idx_c01_full is None else idx_c01_full
    idx_c10_full = idx_c10_x2 if idx_c10_full is None else idx_c10_full
    heatmap0 = None  # detector is None in this config
    return f0, f1, idx_c01_full, idx_c10_full, heatmap0


# ----------------------------------------------------------------------------
# Pure-f32 host-side references (no bf16 dots on the host backend).
# ----------------------------------------------------------------------------
def _layernorm(y, g, b, eps=1e-5):
    mu = y.mean(-1, keepdims=True)
    var = ((y - mu) ** 2).mean(-1, keepdims=True)
    return (y - mu) * jax.lax.rsqrt(var + eps) * g + b


def loftr_encoder_layer_ref_f32(x, params, *, nhead):
    """PyTorch-faithful LoFTREncoderLayer (linear attention), all f32."""
    B, L, C = x.shape
    D = C // nhead
    q = (x @ params["wq"]).reshape(B, L, nhead, D)
    k = (x @ params["wk"]).reshape(B, L, nhead, D)
    v = (x @ params["wv"]).reshape(B, L, nhead, D)
    Q = jax.nn.elu(q) + 1.0
    K = jax.nn.elu(k) + 1.0
    v = v / L
    KV = jnp.einsum("nshd,nshv->nhdv", K, v)
    Z = 1.0 / (jnp.einsum("nlhd,nhd->nlh", Q, K.sum(axis=1)) + 1e-6)
    msg = jnp.einsum("nlhd,nhdv,nlh->nlhv", Q, KV, Z) * L
    msg = msg.reshape(B, L, C) @ params["wm"]
    msg = _layernorm(msg, params["ln1_g"][0], params["ln1_b"][0])
    cat = jnp.concatenate([x, msg], axis=-1)
    h1 = jnp.maximum(cat @ params["mlp_w1"], 0.0)
    m2 = _layernorm(h1 @ params["mlp_w2"], params["ln2_g"][0], params["ln2_b"][0])
    return x + m2


def _rbf(a):
    """Round to bf16 and back to f32 (keeps every host-side dot in f32)."""
    return a.astype(_BF16).astype(_F32)


def loftr_encoder_layer_ref_bf16sim(x, params, *, nhead):
    """Mirrors the kernel's bf16-operand / f32-accumulation policy with f32 dots."""
    B, L, C = x.shape
    D = C // nhead
    xb = _rbf(x)
    q = xb @ _rbf(params["wq"])
    k = xb @ _rbf(params["wk"])
    v = xb @ _rbf(params["wv"])
    Qp = jnp.where(q > 0, q + 1.0, jnp.exp(q))
    Kp = jnp.where(k > 0, k + 1.0, jnp.exp(k))
    KV = jnp.einsum("nlhd,nlhe->nhde",
                    _rbf(Kp).reshape(B, L, nhead, D),
                    _rbf(v).reshape(B, L, nhead, D))
    Ksum = Kp.sum(axis=1)                                            # [B, C] f32
    den = _rbf(Qp * Ksum[:, None, :]).reshape(B, L, nhead, D).sum(-1)
    z = 1.0 / (den + 1e-6)
    msg = jnp.einsum("nlhd,nhde->nlhe",
                     _rbf(Qp).reshape(B, L, nhead, D), _rbf(KV)) * z[..., None]
    msg = msg.reshape(B, L, C)
    msg = _rbf(msg) @ _rbf(params["wm"])
    msg = _layernorm(msg, params["ln1_g"][0], params["ln1_b"][0])
    h1 = _rbf(x) @ _rbf(params["mlp_w1"][:C]) + _rbf(msg) @ _rbf(params["mlp_w1"][C:])
    h1 = jnp.maximum(h1, 0.0)
    m2 = _rbf(h1) @ _rbf(params["mlp_w2"])
    m2 = _layernorm(m2, params["ln2_g"][0], params["ln2_b"][0])
    return x + m2


if __name__ == "__main__":
    B, C, H0, W0 = 2, 32, 8, 8
    H1, W1 = 8, 8
    nhead = 4
    topk = 2
    layer_names = ["self"]

    key = jax.random.PRNGKey(0)
    k0, k1, k2, k3, kw = jax.random.split(key, 5)

    feat0 = jax.random.normal(k0, (B, C, H0, W0), _F32)
    feat1 = jax.random.normal(k1, (B, C, H1, W1), _F32)
    idx_c01 = jax.random.randint(k2, (B, H0 * W0, topk), 0, (H1 // 2) * (W1 // 2))
    idx_c10 = jax.random.randint(k3, (B, H1 * W1, topk), 0, (H0 // 2) * (W0 // 2))

    params = make_params(kw, C)

    f0, f1, idx01_full, idx10_full, heatmap0 = cascade_feature_transformer_forward(
        feat0, feat1, idx_c01, idx_c10, params, nhead=nhead, layer_names=layer_names)
    jax.block_until_ready(f0)
    jax.block_until_ready(f1)

    # ---- correctness checks (all host-side math stays in f32) --------------
    f0_tok = feat0.reshape(B, C, H0 * W0).transpose(0, 2, 1)
    f1_tok = feat1.reshape(B, C, H1 * W1).transpose(0, 2, 1)

    sim0 = loftr_encoder_layer_ref_bf16sim(f0_tok, params, nhead=nhead)
    sim1 = loftr_encoder_layer_ref_bf16sim(f1_tok, params, nhead=nhead)
    assert np.allclose(np.asarray(f0), np.asarray(sim0), rtol=2e-2, atol=2e-2)
    assert np.allclose(np.asarray(f1), np.asarray(sim1), rtol=2e-2, atol=2e-2)

    ref0 = loftr_encoder_layer_ref_f32(f0_tok, params, nhead=nhead)
    ref1 = loftr_encoder_layer_ref_f32(f1_tok, params, nhead=nhead)
    assert np.allclose(np.asarray(f0), np.asarray(ref0), rtol=6e-2, atol=6e-2)
    assert np.allclose(np.asarray(f1), np.asarray(ref1), rtol=6e-2, atol=6e-2)

    assert idx01_full is None and idx10_full is None and heatmap0 is None

    print("KERNEL_OK")
</pallas_src>

<mosaic_0001>
module attributes {stable_mosaic.version = 11 : i64} {
  func.func @_kv_reduce_kernel(%arg0: i32, %arg1: i32, %arg2: memref<1x64x32xf32, #tpu.memory_space<vmem>>, %arg3: memref<32x64xbf16, #tpu.memory_space<vmem>>, %arg4: memref<1x32x32xf32, #tpu.memory_space<vmem>>, %arg5: memref<1x1x32xf32, #tpu.memory_space<vmem>>) attributes {dimension_semantics = [#tpu.dimension_semantics<parallel>, #tpu.dimension_semantics<arbitrary>], iteration_bounds = array<i64: 2, 1>, scalar_prefetch = 0 : i64, scratch_operands = 0 : i64, tpu.core_type = #tpu.core_type<tc>, window_params = [{transform_indices = @transform_0, window_bounds = array<i64: 1, 64, 32>}, {pipeline_mode = #tpu.pipeline_mode<synchronous>, transform_indices = @transform_1, window_bounds = array<i64: 32, 64>}, {transform_indices = @transform_2, window_bounds = array<i64: 1, 32, 32>}, {transform_indices = @transform_3, window_bounds = array<i64: 1, 1, 32>}]} {
    %c0_i32 = arith.constant 0 : i32
    %0 = arith.cmpi eq, %arg1, %c0_i32 : i32
    %1 = arith.extui %0 : i1 to i32
    %c0_i32_0 = arith.constant 0 : i32
    %2 = arith.cmpi ne, %1, %c0_i32_0 : i32
    scf.if %2 {
      %cst_21 = arith.constant 0.000000e+00 : f32
      %33 = vector.broadcast %cst_21 : f32 to vector<1x32x32xf32>
      %c0_22 = arith.constant 0 : index
      %c0_23 = arith.constant 0 : index
      %c0_24 = arith.constant 0 : index
      %34 = vector.load %arg4[%c0_22, %c0_23, %c0_24] : memref<1x32x32xf32, #tpu.memory_space<vmem>>, vector<1x32x32xf32>
      tpu.vector_store %arg4[%c0_22, %c0_23, %c0_24], %33 {strides = array<i32>} : memref<1x32x32xf32, #tpu.memory_space<vmem>>, vector<1x32x32xf32>,
      %cst_25 = arith.constant 0.000000e+00 : f32
      %35 = vector.broadcast %cst_25 : f32 to vector<1x1x32xf32>
      %c0_26 = arith.constant 0 : index
      %c0_27 = arith.constant 0 : index
      %c0_28 = arith.constant 0 : index
      %36 = vector.load %arg5[%c0_26, %c0_27, %c0_28] : memref<1x1x32xf32, #tpu.memory_space<vmem>>, vector<1x1x32xf32>
      tpu.vector_store %arg5[%c0_26, %c0_27, %c0_28], %35 {strides = array<i32>} : memref<1x1x32xf32, #tpu.memory_space<vmem>>, vector<1x1x32xf32>,
    } else {
    }
    %c0 = arith.constant 0 : index
    %c0_1 = arith.constant 0 : index
    %c0_2 = arith.constant 0 : index
    %3 = vector.load %arg2[%c0, %c0_1, %c0_2] : memref<1x64x32xf32, #tpu.memory_space<vmem>>, vector<1x64x32xf32>
    %4 = vector.shape_cast %3 : vector<1x64x32xf32> to vector<64x32xf32>
    %5 = arith.truncf %4 : vector<64x32xf32> to vector<64x32xbf16>
    %c0_3 = arith.constant 0 : index
    %c0_4 = arith.constant 0 : index
    %6 = vector.load %arg3[%c0_3, %c0_4] : memref<32x64xbf16, #tpu.memory_space<vmem>>, vector<32x64xbf16>
    %cst = arith.constant dense<0.000000e+00> : vector<64x64xf32>
    %7 = tpu.matmul %5, %6, %cst {dimension_numbers = #tpu.dot_dimension_numbers<[1], [0], [0], [1], [0, 0, 1, 1], [], []>} : vector<64x32xbf16>, vector<32x64xbf16>, vector<64x64xf32> -> vector<64x64xf32>
    %8 = vector.extract_strided_slice %7 {offsets = [0, 0], sizes = [64, 32], strides = [1, 1]} : vector<64x64xf32> to vector<64x32xf32>
    %cst_5 = arith.constant 0.000000e+00 : f32
    %9 = vector.broadcast %cst_5 : f32 to vector<64x32xf32>
    %10 = arith.cmpf ogt, %8, %9 : vector<64x32xf32>
    %cst_6 = arith.constant 1.000000e+00 : f32
    %11 = vector.broadcast %cst_6 : f32 to vector<64x32xf32>
    %12 = arith.addf %8, %11 : vector<64x32xf32>
    %13 = math.exp %8 : vector<64x32xf32>
    %14 = arith.select %10, %12, %13 : vector<64x32xi1>, vector<64x32xf32>
    %15 = vector.extract_strided_slice %7 {offsets = [0, 32], sizes = [64, 32], strides = [1, 1]} : vector<64x64xf32> to vector<64x32xf32>
    %16 = arith.truncf %15 : vector<64x32xf32> to vector<64x32xbf16>
    %c0_7 = arith.constant 0 : index
    %c0_8 = arith.constant 0 : index
    %c0_9 = arith.constant 0 : index
    %17 = vector.load %arg4[%c0_7, %c0_8, %c0_9] : memref<1x32x32xf32, #tpu.memory_space<vmem>>, vector<1x32x32xf32>
    %18 = vector.shape_cast %17 : vector<1x32x32xf32> to vector<32x32xf32>
    %19 = arith.truncf %14 : vector<64x32xf32> to vector<64x32xbf16>
    %cst_10 = arith.constant dense<0.000000e+00> : vector<32x32xf32>
    %20 = tpu.matmul %19, %16, %cst_10 {dimension_numbers = #tpu.dot_dimension_numbers<[0], [0], [1], [1], [0, 1, 1, 1], [], []>} : vector<64x32xbf16>, vector<64x32xbf16>, vector<32x32xf32> -> vector<32x32xf32>
    %21 = arith.addf %18, %20 : vector<32x32xf32>
    %c0_11 = arith.constant 0 : index
    %c0_12 = arith.constant 0 : index
    %c0_13 = arith.constant 0 : index
    %22 = vector.load %arg4[%c0_11, %c0_12, %c0_13] : memref<1x32x32xf32, #tpu.memory_space<vmem>>, vector<1x32x32xf32>
    %23 = vector.shape_cast %22 : vector<1x32x32xf32> to vector<32x32xf32>
    %24 = vector.shape_cast %21 : vector<32x32xf32> to vector<1x32x32xf32>
    tpu.vector_store %arg4[%c0_11, %c0_12, %c0_13], %24 {strides = array<i32>} : memref<1x32x32xf32, #tpu.memory_space<vmem>>, vector<1x32x32xf32>,
    %c0_14 = arith.constant 0 : index
    %c0_15 = arith.constant 0 : index
    %c0_16 = arith.constant 0 : index
    %25 = vector.load %arg5[%c0_14, %c0_15, %c0_16] : memref<1x1x32xf32, #tpu.memory_space<vmem>>, vector<1x1x32xf32>
    %26 = vector.shape_cast %25 : vector<1x1x32xf32> to vector<1x32xf32>
    %cst_17 = arith.constant dense<0.000000e+00> : vector<32xf32>
    %27 = vector.multi_reduction <add>, %14, %cst_17 [0] : vector<64x32xf32> to vector<32xf32>
    %28 = vector.shape_cast %27 : vector<32xf32> to vector<1x32xf32>
    %29 = arith.addf %26, %28 : vector<1x32xf32>
    %c0_18 = arith.constant 0 : index
    %c0_19 = arith.constant 0 : index
    %c0_20 = arith.constant 0 : index
    %30 = vector.load %arg5[%c0_18, %c0_19, %c0_20] : memref<1x1x32xf32, #tpu.memory_space<vmem>>, vector<1x1x32xf32>
    %31 = vector.shape_cast %30 : vector<1x1x32xf32> to vector<1x32xf32>
    %32 = vector.shape_cast %29 : vector<1x32xf32> to vector<1x1x32xf32>
    tpu.vector_store %arg5[%c0_18, %c0_19, %c0_20], %32 {strides = array<i32>} : memref<1x1x32xf32, #tpu.memory_space<vmem>>, vector<1x1x32xf32>,
    return
  }
  func.func @transform_0(%arg0: i32, %arg1: i32) -> (i32, i32, i32) {
    %c0_i32 = arith.constant 0 : i32
    %c0_i32_0 = arith.constant 0 : i32
    return %arg0, %arg1, %c0_i32 : i32, i32, i32
  }
  func.func @transform_1(%arg0: i32, %arg1: i32) -> (i32, i32) {
    %c0_i32 = arith.constant 0 : i32
    %c0_i32_0 = arith.constant 0 : i32
    %c0_i32_1 = arith.constant 0 : i32
    return %c0_i32, %c0_i32_0 : i32, i32
  }
  func.func @transform_2(%arg0: i32, %arg1: i32) -> (i32, i32, i32) {
    %c0_i32 = arith.constant 0 : i32
    %c0_i32_0 = arith.constant 0 : i32
    %c0_i32_1 = arith.constant 0 : i32
    return %arg0, %c0_i32, %c0_i32_0 : i32, i32, i32
  }
  func.func @transform_3(%arg0: i32, %arg1: i32) -> (i32, i32, i32) {
    %c0_i32 = arith.constant 0 : i32
    %c0_i32_0 = arith.constant 0 : i32
    %c0_i32_1 = arith.constant 0 : i32
    return %arg0, %c0_i32, %c0_i32_0 : i32, i32, i32
  }
}

</mosaic_0001>

<bundles_post_ra>
// kernel: tpu_custom_call.1
= control target key start
LH: loop header
LB: loop body
LE: loop exit
PB: predicated region body
PF: predicated region fallthrough
CT: control target
= control target key end

     0   :  { %9 = vsyncpa [#allocation3], 0  ;;  %s1022_s0 = inlined_call_operand.vmem [shape: f32[2,64,32], index: 0, kind: input, shape index: {}]   ;;  %s1023_s1 = inlined_call_operand.vmem [shape: bf16[32,64], index: 1, kind: input, shape index: {}]   ;;  %s1024_s2 = inlined_call_operand.hbm [shape: f32[2,32,32], index: 2, kind: output, shape index: {0}]   ;;  %s1025_s3 = inlined_call_operand.hbm [shape: f32[2,1,32], index: 3, kind: output, shape index: {1}]  }
   0x1   :  { %11 = vsyncpa [#allocation3 + $0x1], 0 }
   0x2   :  { %12 = vsyncpa [#allocation5], 0 }
   0x3   :  { %14 = vsyncpa [#allocation5 + $0x1], 0  ;;  %s823_s12 = smov 0   ;;  %s825_s13 = smov 0  }
   0x4   :  { %s827_s14 = smov 0   ;;  %s829_s15 = smov 0  }
   0x5   :  { %s831_s16 = smov 0   ;;  %s833_s17 = smov 0  }
   0x6 LB: > { %s569_s18 = sadd.s32 4294967295, %s797_s17   ;;  %s570_s19 = sadd.s32 4294967294, %s797_s17   ;;  %s797_s17 = sphi %s833_s17, %s20_s17   ;;  %s793_s16 = sphi %s831_s16, %s1032_s16   ;;  %s789_s15 = sphi %s829_s15, %s1031_s15   ;;  %s785_s14 = sphi %s827_s14, %s1030_s14   ;;  %s781_s13 = sphi %s825_s13, %s1029_s13   ;;  %s777_s12 = sphi %s823_s12, %s1028_s12  }
   0x7   : > { %s32_s20 = sadd.s32 1, %s793_s16  ;;  %s88_s21 = sadd.s32 1, %s785_s14 }
   0x8   : > { %p34_p0 = scmp.ge.s32.totalorder %s32_s20, 2  ;;  %p98_p1 = scmp.ne.s32.totalorder %s785_s14, %s781_s13 }
   0x9   : > { %p99_p2 = scmp.eq.s32.totalorder %s569_s18, 1  ;;  %p104_p3 = scmp.ne.s32.totalorder %s781_s13, %s777_s12 }
   0xa   : > { %s1034_s20 = smov (%p34_p0, %s32_s20), 0  ;;  %p105_p5 = scmp.eq.s32.totalorder %s570_s19, 1 }
   0xb   : > { %p863_p4 = por %p99_p2, %p98_p1  ;;  %s85_s23 = ssub.s32 %s793_s16, %s1034_s20 }
   0xc   : > { %p573_p6 = scmp.ge.s32.totalorder %s797_s17, 1  ;;  %p86_p7 = scmp.eq.s32.totalorder %s85_s23, 0 }
   0xd   : > { %p870_p8 = por %p105_p5, %p104_p3  ;;  %p165_p9 = scmp.lt.s32.totalorder %s797_s17, 3 }
   0xe   : > { %s876_s25 = scalar_select %p86_p7, %s785_s14, %s88_s21  }
   0xf   : > { %p166_p10 = pnand %p573_p6, %p165_p9 }
  0x10   : > { %p198_p11 = scmp.lt.s32.totalorder (!%p166_p10), %s789_s15, 1  ;;  %s902_s8 = sand.u32 (!%p166_p10), 1, %s781_s13  }
  0x11   : > { %169 = sbr.rel (%p166_p10) target bundleno = 500 (0x1f4), region = 28  ;;  %s912_s9 = scalar_lea.vmem (!%p166_p10), [#allocation4], %s902_s8 }
  0x12   : > { %s800_s10 = smov (!%p166_p10), 96   ;;  %s574_s11 = sshll.u32 (!%p166_p10), %s902_s8, 5 }
  0x13   : > { %s942_s18 = scalar_lea.vmem (!%p166_p10), [#allocation2], %s574_s11  ;;  %s463_s23 = scalar_lea.hbm (!%p166_p10), %s1025_s3, %s789_s15 }
  0x14   : > { %s465_s26 = sshll.u32 (!%p166_p10), %s912_s9, 4  ;;  %s467_s27 = sshll.u32 (!%p166_p10), %s463_s23, 4  ;;  %s466_s26 = int_to_ptr.vmem [resolvable:$true] %s465_s26  ;;  %s468_s27 = int_to_ptr.hbm [resolvable:$true] %s467_s27 }
  0x15   : > { %s438_s28 = scalar_lea.sflag (!%p166_p10), [#allocation5], %s902_s8  ;;  %s701_s29 = sshra.s32 (!%p166_p10), %s468_s27, 4  ;;  %s702_s29 = int_to_ptr.hbm [resolvable:$true] %s701_s29 }
  0x16   : > { %v598_v0 = vld [vmem:[%s1023_s1 + $0x8] sm:$0xff]  ;;  %v597_v1 = vld [vmem:[%s1023_s1] sm:$0xff]  ;;  %s199_s30 = scalar_select %p198_p11, %s789_s15, 1  ;;  %vm212_vm0 = vcmask 261120   ;;  %vm217_vm3 = vcmask 253952   ;;  %v799_v30 = vmov 0.0  }
  0x17   : > { %266 = vmatpush.bf16.msra.mxu0 %v598_v0  ;;  %600 = vmatpush.bf16.msra.mxu2 %v598_v0  ;;  %218 = vst.msk [vmem:[%s912_s9] sm:$0x1] %vm217_vm3, %v799_v30  ;;  %vm373_vm10 = vcmask 523264   ;;  %s707_s6 = scalar_lea.hbm %s1025_s3, 2  ;;  %p708_p1 = scmp.lt.s32.totalorder %s702_s29, %s1025_s3 }
  0x18   : > { %s596_s4 = sshll.u32 %s199_s30, 6  ;;  %213 = vst.msk [vmem:[%s942_s18] sm:$0xff] %vm212_vm0, %v799_v30  ;;  %s703_s30 = scalar_lea.hbm %s702_s29, 1 }
  0x19   : > { %s205_s7 = scalar_lea.vmem %s1022_s0, %s596_s4  ;;  %214 = vst.msk [vmem:[%s942_s18 + $0x8] sm:$0xff] %vm212_vm0, %v799_v30  ;;  %p704_p12 = scmp.ne.s32.totalorder %s702_s29, %s703_s30 }
  0x1a   : > { %v219_v2 = vld [vmem:[%s205_s7] sm:$0xff]  ;;  %v220_v3 = vld [vmem:[%s205_s7 + $0x8] sm:$0xff]  ;;  %v221_v8 = vld [vmem:[%s205_s7 + $0x10] sm:$0xff]  ;;  %215 = vst.msk [vmem:[%s942_s18 + $0x10] sm:$0xff] %vm212_vm0, %v799_v30  ;;  %p709_p2 = scmp.lt.s32.totalorder %s707_s6, %s703_s30 }
  0x1b   : > { %267 = vmatpush.bf16.msra.mxu0 %v597_v1  ;;  %601 = vmatpush.bf16.msra.mxu2 %v597_v1  ;;  %v223_v4 = vld [vmem:[%s205_s7 + $0x20] sm:$0xff]  ;;  %v227_v5 = vpack.c.bf16 %v220_v3, %v219_v2  ;;  %v224_v6 = vld [vmem:[%s205_s7 + $0x28] sm:$0xff]  ;;  %v222_v9 = vld [vmem:[%s205_s7 + $0x18] sm:$0xff]  ;;  %216 = vst.msk [vmem:[%s942_s18 + $0x18] sm:$0xff] %vm212_vm0, %v799_v30  ;;  %p705_p13 = pnand %p704_p12, %p863_p4 }
  0x1c   : > { %v229_v7 = vpack.c.bf16 %v224_v6, %v223_v4  ;;  %v225_v10 = vld [vmem:[%s205_s7 + $0x30] sm:$0xff]  ;;  %v226_v11 = vld [vmem:[%s205_s7 + $0x38] sm:$0xff]  ;;  %v228_v12 = vpack.c.bf16 %v222_v9, %v221_v8  ;;  %p710_p3 = por %p709_p2, %p708_p1 }
  0x1d   : > { %v230_v13 = vpack.c.bf16 %v226_v11, %v225_v10  ;;  %p706_p0 = pneg %p705_p13 }
  0x1e   : > { %585 = vmatmul.msk.bf16.vlgmr.msra.gmra.mxu0 %vm212_vm0, %v227_v5  ;;  %587 = vmatmul.msk.bf16.vlgmr.msra.gmra.mxu2 %vm212_vm0, %v229_v7 }
  0x1f   : > { %p711_p5 = pnand %p710_p3, %p706_p0 }
  0x2e   : > { %586 = vmatmul.msk.bf16.gmra.mxu0 %vm212_vm0, %v228_v12  ;;  %588 = vmatmul.msk.bf16.gmra.mxu2 %vm212_vm0, %v230_v13 }
  0x9b   : > { %v893_v14 = vpop.f32.mrf.mxu0 }
  0x9c   : > { %v305_v15 = vmul.f32 1.442695, %v893_v14  ;;  %v297_v22 = vadd.f32 1.0, %v893_v14  ;;  %vm289_vm1 = vcmp.gt.f32.partialorder %v893_v14, 0.0 }
  0x9e   : > { %671 = vpow2.f32 %v305_v15 }
  0xa1   : > { %v896_v16 = vpop.f32.mrf.mxu2 }
  0xa2   : > { %v313_v29 = vmul.f32 1.442695, %v896_v16  ;;  %v301_v42 = vadd.f32 1.0, %v896_v16  ;;  %vm293_vm5 = vcmp.gt.f32.partialorder %v896_v16, 0.0 }
  0xa3   : > { %v898_v17 = vpop.f32.mrf.mxu0 }
  0xa4   : > { %v307_v18 = vmul.f32 1.442695, %v898_v17  ;;  %v672_v19 = vpop.eup %671  ;;  %v298_v23 = vadd.f32 1.0, %v898_v17  ;;  %vm290_vm2 = vcmp.gt.f32.partialorder %v898_v17, 0.0  ;;  %v329_v55 = vpack.c.bf16 %v898_v17, %v893_v14 }
  0xa5   : > { %v321_v26 = vsel %vm289_vm1, %v297_v22, %v672_v19  ;;  %v407_v19 = vld [vmem:[%s912_s9] sm:$0x1] }
  0xa6   : > { %673 = vpow2.f32 %v307_v18  ;;  %v408_v43 = vsel %vm212_vm0, %v321_v26, 0.0 }
  0xa9   : > { %v904_v20 = vpop.f32.mrf.mxu2 }
  0xaa   : > { %v315_v31 = vmul.f32 1.442695, %v904_v20  ;;  %v302_v45 = vadd.f32 1.0, %v904_v20  ;;  %vm294_vm7 = vcmp.gt.f32.partialorder %v904_v20, 0.0  ;;  %v331_v6 = vpack.c.bf16 %v904_v20, %v896_v16 }
  0xab   : > { %v274_v21 = vpop.f32.mrf.mxu0 }
  0xac   : > { %v674_v24 = vpop.eup %673  ;;  %v309_v25 = vmul.f32 1.442695, %v274_v21  ;;  %v299_v38 = vadd.f32 1.0, %v274_v21  ;;  %vm291_vm4 = vcmp.gt.f32.partialorder %v274_v21, 0.0 }
  0xad   : > { %v322_v27 = vsel %vm290_vm2, %v298_v23, %v674_v24 }
  0xae   : > { %675 = vpow2.f32 %v309_v25  ;;  %v337_v28 = vpack.c.bf16 %v322_v27, %v321_v26  ;;  %v409_v39 = vsel %vm212_vm0, %v322_v27, 0.0 }
  0xaf   : > { %677 = vpow2.f32 %v313_v29  ;;  %v410_v46 = vadd.f32 %v409_v39, %v408_v43 }
  0xb0   : > { %341 = vxpose.xlu2.c.b16.start [1/4] (short) (narrow) %v337_v28, 32  ;;  %679 = vpow2.f32 %v315_v31 }
  0xb1   : > { %v284_v32 = vpop.f32.mrf.mxu2 }
  0xb2   : > { %v317_v33 = vmul.f32 1.442695, %v284_v32  ;;  %v303_v50 = vadd.f32 1.0, %v284_v32  ;;  %vm295_vm8 = vcmp.gt.f32.partialorder %v284_v32, 0.0 }
  0xb3   : > { %v276_v34 = vpop.f32.mrf.mxu0 }
  0xb4   : > { %v676_v35 = vpop.eup %675  ;;  %v311_v36 = vmul.f32 1.442695, %v276_v34  ;;  %v330_v37 = vpack.c.bf16 %v276_v34, %v274_v21  ;;  %681 = vpow2.f32 %v317_v33  ;;  %v300_v51 = vadd.f32 1.0, %v276_v34 }
  0xb5   : > { %v323_v40 = vsel %vm291_vm4, %v299_v38, %v676_v35  ;;  %v678_v41 = vpop.eup %677  ;;  %vm292_vm6 = vcmp.gt.f32.partialorder %v276_v34, 0.0 }
  0xb6   : > { %683 = vpow2.f32 %v311_v36  ;;  %363 = vrot.lane.b32.xlu1 %v330_v37, %s800_s10  ;;  %v680_v44 = vpop.eup %679  ;;  %v411_v48 = vsel %vm212_vm0, %v323_v40, 0.0  ;;  %v325_v58 = vsel %vm293_vm5, %v301_v42, %v678_v41 }
  0xb7   : > { %v412_v57 = vadd.f32 %v411_v48, %v410_v46  ;;  %v326_v62 = vsel %vm294_vm7, %v302_v45, %v680_v44  ;;  %v415_v1 = vsel %vm212_vm0, %v325_v58, 0.0 }
  0xb8   : > { %v417_v3 = vsel %vm212_vm0, %v326_v62, 0.0  ;;  %v339_v15 = vpack.c.bf16 %v326_v62, %v325_v58 }
  0xb9   : > { %v286_v47 = vpop.f32.mrf.mxu2 }
  0xba   : > { %v682_v49 = vpop.eup %681  ;;  %v319_v52 = vmul.f32 1.442695, %v286_v47  ;;  %v332_v53 = vpack.c.bf16 %v286_v47, %v284_v32  ;;  %v304_v0 = vadd.f32 1.0, %v286_v47  ;;  %vm296_vm9 = vcmp.gt.f32.partialorder %v286_v47, 0.0 }
  0xbb   : > { %v327_v63 = vsel %vm295_vm8, %v303_v50, %v682_v49 }
  0xbc   : > { %v684_v54 = vpop.eup %683  ;;  %685 = vpow2.f32 %v319_v52  ;;  %367 = vrot.lane.b32.xlu0 %v332_v53, %s800_s10  ;;  %v419_v4 = vsel %vm212_vm0, %v327_v63, 0.0 }
  0xbd   : > { %v324_v56 = vsel %vm292_vm6, %v300_v51, %v684_v54 }
  0xbe   : > { %361 = vrot.lane.b32.xlu1 %v329_v55, %s800_s10  ;;  %v338_v59 = vpack.c.bf16 %v324_v56, %v323_v40  ;;  %v413_v60 = vsel %vm212_vm0, %v324_v56, 0.0 }
  0xbf   : > { %v414_v61 = vadd.f32 %v413_v60, %v412_v57 }
  0xc0   : > { %342 = vxpose.xlu2.c.b16.cont [2/4] (short) (narrow) %v338_v59, 32 }
  0xc1   : > { %v416_v2 = vadd.f32 %v415_v1, %v414_v61 }
  0xc2   : > { %v686_v5 = vpop.eup %685 }
  0xc3   : > { %v418_v7 = vadd.f32 %v417_v3, %v416_v2  ;;  %v328_v8 = vsel %vm296_vm9, %v304_v0, %v686_v5 }
  0xc4   : > { %365 = vrot.lane.b32.xlu0 %v331_v6, %s800_s10  ;;  %v421_v10 = vsel %vm212_vm0, %v328_v8, 0.0  ;;  %v340_v20 = vpack.c.bf16 %v328_v8, %v327_v63 }
  0xc5   : > { %v420_v9 = vadd.f32 %v419_v4, %v418_v7 }
  0xc7   : > { %v422_v11 = vadd.f32 %v421_v10, %v420_v9 }
  0xc9   : > { %v423_v12 = vrot.slane %v422_v11, 4 }
  0xcb   : > { %v424_v13 = vadd.f32 %v423_v12, %v422_v11 }
  0xcd   : > { %v425_v14 = vrot.slane %v424_v13, 2 }
  0xcf   : > { %v426_v17 = vadd.f32 %v425_v14, %v424_v13 }
  0xd0   : > { %343 = vxpose.xlu2.c.b16.cont [3/4] (short) (narrow) %v339_v15, 32 }
  0xd1   : > { %v427_v18 = vrot.slane %v426_v17, 1 }
  0xd3   : > { %v428_v21 = vadd.f32 %v427_v18, %v426_v17 }
  0xd5   : > { %v429_v16 = vadd.f32 %v428_v21, %v407_v19 }
  0xd7   : > { %431 = vst.msk [vmem:[%s912_s9] sm:$0x1] %vm217_vm3, %v429_v16 }
  0xe0   : > { %344 = vxpose.xlu2.c.b16.end [4/4] (short) (narrow) %v340_v20, 32 }
 0x128   : > { %v364_v23 = vpop.permute.xlu1 %363 }
 0x12e   : > { %v368_v22 = vpop.permute.xlu0 %367 }
 0x12f   : > { %384 = vmatpush.bf16.msra.mxu1 %v368_v22  ;;  %602 = vmatpush.bf16.msra.mxu3 %v368_v22 }
 0x130   : > { %v362_v25 = vpop.permute.xlu1 %361 }
 0x136   : > { %v366_v24 = vpop.permute.xlu0 %365 }
 0x137   : > { %385 = vmatpush.bf16.msra.mxu1 %v366_v24  ;;  %603 = vmatpush.bf16.msra.mxu3 %v366_v24 }
 0x13b   : > { %386 = vmatpush.bf16.msra.mxu1 %v364_v23  ;;  %604 = vmatpush.bf16.msra.mxu3 %v364_v23 }
 0x13f   : > { %387 = vmatpush.bf16.msra.mxu1 %v362_v25  ;;  %605 = vmatpush.bf16.msra.mxu3 %v362_v25 }
 0x151   : > { %v349_v26 = vpop.trf.xlu2 }
 0x152   : > { %589 = vmatmul.msk.bf16.vlgmr.msra.gmra.mxu1 %vm373_vm10, %v349_v26 }
 0x161   : > { %v350_v27 = vpop.trf.xlu2 }
 0x162   : > { %590 = vmatmul.msk.bf16.vlgmr.msra.gmra.mxu3 %vm373_vm10, %v350_v27 }
 0x163   : > { %714 = shalt.err (!%p711_p5)
}
 0x164   : > { %607 = dma.vmem_to_hbm [thread:$0]  (%p863_p4), %s466_s26, 16, %s468_s27, %s438_s28   ;;  %v333_v28 = vld [vmem:[%s942_s18] sm:$0xff]  ;;  %v334_v31 = vld [vmem:[%s942_s18 + $0x8] sm:$0xff]  ;;  %v335_v34 = vld [vmem:[%s942_s18 + $0x10] sm:$0xff] }
 0x165   : > { %s599_s9 = sshll.u32 %s789_s15, 5  ;;  %s449_s23 = sshll.u32 %s942_s18, 4  ;;  %v336_v37 = vld [vmem:[%s942_s18 + $0x18] sm:$0xff]  ;;  %s450_s23 = int_to_ptr.vmem [resolvable:$true] %s449_s23 }
 0x166   : > { %s448_s21 = scalar_lea.hbm %s1024_s2, %s599_s9  ;;  %s433_s27 = scalar_lea.sflag [#allocation3], %s902_s8 }
 0x167   : > { %s451_s26 = sshll.u32 %s448_s21, 4  ;;  %s735_s4 = scalar_lea.hbm %s1024_s2, 64  ;;  %s452_s26 = int_to_ptr.hbm [resolvable:$true] %s451_s26 }
 0x168   : > { %s729_s15 = sshra.s32 %s452_s26, 4  ;;  %s730_s15 = int_to_ptr.hbm [resolvable:$true] %s729_s15 }
 0x169   : > { %s731_s28 = scalar_lea.hbm %s730_s15, 32  ;;  %p736_p10 = scmp.lt.s32.totalorder %s730_s15, %s1024_s2 }
 0x16a   : > { %p732_p6 = scmp.ne.s32.totalorder %s730_s15, %s731_s28  ;;  %p737_p11 = scmp.lt.s32.totalorder %s735_s4, %s731_s28 }
 0x16c   : > { %p733_p7 = pnand %p732_p6, %p863_p4  ;;  %p738_p12 = por %p737_p11, %p736_p10 }
 0x16e   : > { %p734_p9 = pneg %p733_p7 }
 0x170   : > { %p739_p13 = pnand %p738_p12, %p734_p9 }
 0x1cf   : > { %v389_v29 = vpop.f32.mrf.mxu1 }
 0x1d0   : > { %v399_v30 = vadd.f32 %v389_v29, %v333_v28 }
 0x1d2   : > { %403 = vst.msk [vmem:[%s942_s18] sm:$0xff] %vm212_vm0, %v399_v30 }
 0x1d7   : > { %v391_v32 = vpop.f32.mrf.mxu1 }
 0x1d8   : > { %v400_v33 = vadd.f32 %v391_v32, %v334_v31 }
 0x1da   : > { %404 = vst.msk [vmem:[%s942_s18 + $0x8] sm:$0xff] %vm212_vm0, %v400_v33 }
 0x1e5   : > { %v394_v35 = vpop.f32.mrf.mxu3 }
 0x1e6   : > { %v401_v36 = vadd.f32 %v394_v35, %v335_v34 }
 0x1e8   : > { %405 = vst.msk [vmem:[%s942_s18 + $0x10] sm:$0xff] %vm212_vm0, %v401_v36 }
 0x1ed   : > { %v396_v38 = vpop.f32.mrf.mxu3 }
 0x1ee   : > { %v402_v39 = vadd.f32 %v396_v38, %v336_v37 }
 0x1f0   : > { %406 = vst.msk [vmem:[%s942_s18 + $0x18] sm:$0xff] %vm212_vm0, %v402_v39 }
 0x1f1   : > { %742 = shalt.err (!%p739_p13)
}
 0x1f2   : > { %s801_s8 = smov 128   ;;  %s802_s18 = smov 8  }
 0x1f3   : > { %606 = dma.vmem_to_hbm [thread:$0]  (%p863_p4), %s450_s23, 512, %s452_s26, %s433_s27, %s801_s8, %s801_s8, %s802_s18  }
 0x1f4 PF: > { %p617_p0 = scmp.ge.s32.totalorder %s797_s17, 2  ;;  %s479_s7 = sand.u32 1, %s777_s12  }
 0x1f5   : > { %s480_s10 = scalar_lea.sflag [#allocation3], %s479_s7 }
 0x1f6   : > { %p611_p1 = pnand %p617_p0, %p870_p8 }
 0x1f8   : > { %p612_p2 = pneg %p611_p1 }
 0x1fa   : > { %768 = dma.done.wait (%p612_p2), %s480_s10, 512  }
 0x1fb   : > { %770 = vsyncadd (%p612_p2), %s480_s10, 4294966784  ;;  %s490_s9 = scalar_lea.sflag [#allocation5], %s479_s7 }
 0x1fc   : > { %772 = dma.done.wait (%p612_p2), %s490_s9, 16  }
 0x1fd   : > { %774 = vsyncadd (%p612_p2), %s490_s9, 4294967280  ;;  %s20_s17 = sadd.s32 1, %s797_s17   ;;  %s1028_s12 = smov %s781_s13 }
 0x1fe   : > { %p17_p3 = scmp.ge.s32.totalorder %s20_s17, 4   ;;  %s1029_s13 = smov %s785_s14 }
 0x1ff   : > { %s1030_s14 = smov %s876_s25  ;;  %s1031_s15 = smov %s793_s16 }
 0x200   : > { %s1032_s16 = smov %s1034_s20  ;;  %19 = sbr.rel (!%p17_p3) target bundleno = 6 (0x6), region = 84 }
 0x205   :  { %495 = vsyncpa [#allocation3], 1 }
 0x206   :  { %497 = vsyncpa [#allocation3 + $0x1], 1 }
 0x207   :  { %498 = vsyncpa [#allocation5], 1 }
 0x208   :  { %500 = vsyncpa [#allocation5 + $0x1], 1 }

</bundles_post_ra>
